<compile_context>
chip_gen: v7x
topology: tpu7x:2x2x1
jax: 0.10.0
libtpu: 0.0.40
codegen_flags: <defaults>
</compile_context>

<pallas_src>
from functools import partial as fpartial

import jax
import jax.numpy as jnp
from jax.experimental import pallas as pl
from jax.experimental.pallas import tpu as pltpu

_LANES = 128
_MAX_T_CHUNK = 32  # cap on RK4 steps unrolled per grid iteration


def _round_up(n, m):
    return ((n + m - 1) // m) * m


# ---------------------------------------------------------------------------
# Kernel 1: single vector-field evaluation (what Partial.__call__ uses).
# Transposed, lane-dense layout: state is [D, Bp] with batch on the 128 lanes.
# ---------------------------------------------------------------------------
def _vf_kernel(xt_ref, w1t_ref, b1_ref, w2t_ref, b2_ref, o_ref):
    xt = xt_ref[...]           # [D, Bp]
    w1t = w1t_ref[...]         # [H, D]
    d_in = w1t.shape[1]
    h = b1_ref[...]            # [H, 1] -> lane-broadcasts to [H, Bp]
    for d in range(d_in):      # static D = 2: VPU broadcast-FMAs, skip the MXU
        h = h + w1t[:, d:d + 1] * xt[d:d + 1, :]
    h = jnp.tanh(h)
    # K = H = 32 contraction -> MXU, f32 accumulation.
    o_ref[...] = jnp.dot(w2t_ref[...], h, preferred_element_type=jnp.float32) + b2_ref[...]


@jax.jit
def _vf_forward(x, w1, b1, w2, b2):
    B, D = x.shape
    H = w1.shape[1]
    Bp = _round_up(B, _LANES)
    xt = jnp.zeros((D, Bp), jnp.float32).at[:, :B].set(x.T)
    out_t = pl.pallas_call(
        _vf_kernel,
        out_shape=jax.ShapeDtypeStruct((D, Bp), jnp.float32),
        in_specs=[pl.BlockSpec(memory_space=pltpu.MemorySpace.VMEM)] * 5,
        out_specs=pl.BlockSpec(memory_space=pltpu.MemorySpace.VMEM),
    )(xt, w1.T, b1.reshape(H, 1), w2.T, b2.reshape(D, 1))
    return out_t[:, :B].T


# ---------------------------------------------------------------------------
# Kernel 2: fused, time-chunked RK4 integration.  One pallas_call covers all
# time steps: weights resident in VMEM (constant index_maps), state carried in
# a VMEM scratch across grid steps, T_CHUNK steps unrolled per grid iteration.
# ---------------------------------------------------------------------------
def _make_integrate_kernel(dt, t_chunk):
    def kernel(x0_ref, w1t_ref, b1_ref, w2t_ref, b2_ref, traj_ref, state_ref):
        @pl.when(pl.program_id(0) == 0)
        def _():
            state_ref[...] = x0_ref[...]

        d, bp = state_ref.shape
        h_dim = w1t_ref.shape[0]

        # Hoisted once per chunk: JAX does not CSE broadcast_in_dim, so leaving
        # these inside rhs() would re-materialize ~3-4 broadcasts per RHS call.
        w1t = w1t_ref[...]                                         # [H, D]
        w2t = w2t_ref[...]                                         # [D, H]
        b1b = jnp.broadcast_to(b1_ref[...], (h_dim, bp))           # [H, Bp]
        b2b = jnp.broadcast_to(b2_ref[...], (d, bp))               # [D, Bp]
        w1c = [jnp.broadcast_to(w1t[:, i:i + 1], (h_dim, bp)) for i in range(d)]

        def rhs(z):
            # Layer 1 (K = D = 2): pure VPU broadcast-FMAs (skip MXU push/pop).
            h = b1b
            for i in range(d):
                h = h + w1c[i] * z[i:i + 1, :]
            h = jnp.tanh(h)
            # Layer 2 (K = H = 32): MXU, f32 accumulation, bias folded into the
            # consumer so the VPU add overlaps the MXU result pop.
            return jnp.dot(w2t, h, preferred_element_type=jnp.float32) + b2b

        # Static (fully unrolled) chunk loop: LLO gets full visibility and every
        # trajectory store has a static sublane offset.  Live set is ~a vreg.
        x = state_ref[...]
        for t in range(t_chunk):
            k1 = rhs(x)
            k2 = rhs(x + (0.5 * dt) * k1)
            k3 = rhs(x + (0.5 * dt) * k2)
            k4 = rhs(x + dt * k3)
            x = x + (dt / 6.0) * (k1 + 2.0 * k2 + 2.0 * k3 + k4)
            traj_ref[:, t, :] = x
        state_ref[...] = x

    return kernel


@fpartial(jax.jit, static_argnames=("dt", "num_steps"))
def _integrate_impl(x0, w1, b1, w2, b2, *, dt, num_steps):
    B, D = x0.shape
    H = w1.shape[1]
    Bp = _round_up(B, _LANES)

    # Chunk the time axis: multiple of 8 (dense sublane tiles), capped so the
    # unrolled body stays a reasonable size.  For small num_steps this collapses
    # to a single grid step writing the whole trajectory.
    t_chunk = min(_round_up(num_steps, 8), _MAX_T_CHUNK)
    steps_padded = _round_up(num_steps, t_chunk)
    num_chunks = steps_padded // t_chunk

    x0t = jnp.zeros((D, Bp), jnp.float32).at[:, :B].set(x0.T)

    traj_t = pl.pallas_call(
        _make_integrate_kernel(float(dt), t_chunk),
        out_shape=jax.ShapeDtypeStruct((D, steps_padded, Bp), jnp.float32),
        grid_spec=pltpu.PrefetchScalarGridSpec(
            num_scalar_prefetch=0,
            grid=(num_chunks,),
            in_specs=[
                pl.BlockSpec((D, Bp), lambda i: (0, 0)),   # x0 (used at step 0)
                pl.BlockSpec((H, D), lambda i: (0, 0)),    # W1^T  -- resident
                pl.BlockSpec((H, 1), lambda i: (0, 0)),    # b1    -- resident
                pl.BlockSpec((D, H), lambda i: (0, 0)),    # W2^T  -- resident
                pl.BlockSpec((D, 1), lambda i: (0, 0)),    # b2    -- resident
            ],
            # Dense (8,128)-aligned writeback: trailing tile is (t_chunk, Bp).
            out_specs=pl.BlockSpec((D, t_chunk, Bp), lambda i: (0, i, 0)),
            scratch_shapes=[pltpu.VMEM((D, Bp), jnp.float32)],  # carried state
        ),
        compiler_params=pltpu.CompilerParams(
            # Sequential: state carries across time chunks -> must be arbitrary.
            dimension_semantics=("arbitrary",),
        ),
    )(x0t, w1.T, b1.reshape(H, 1), w2.T, b2.reshape(D, 1))

    # [D, steps, B] -> [num_steps, B, D]
    return traj_t[:, :num_steps, :B].transpose(1, 2, 0)


# ---------------------------------------------------------------------------
# Module wrappers mirroring the PyTorch script.
# ---------------------------------------------------------------------------
class SpringODEFunc:
    """Wrapped module: MLP vector field with an `nfe` counter."""

    def __init__(self, state_dim, hidden_dim, key):
        k1, k2, k3, k4 = jax.random.split(key, 4)
        s1 = 1.0 / jnp.sqrt(state_dim)
        s2 = 1.0 / jnp.sqrt(hidden_dim)
        self.w1 = jax.random.uniform(k1, (state_dim, hidden_dim), jnp.float32, -s1, s1)
        self.b1 = jax.random.uniform(k2, (hidden_dim,), jnp.float32, -s1, s1)
        self.w2 = jax.random.uniform(k3, (hidden_dim, state_dim), jnp.float32, -s2, s2)
        self.b2 = jax.random.uniform(k4, (state_dim,), jnp.float32, -s2, s2)
        self.nfe = 0

    def __call__(self, x):
        return _vf_forward(x, self.w1, self.b1, self.w2, self.b2)


class Partial:
    """JAX/Pallas equivalent of the PyTorch `Partial` wrapper."""

    def __init__(self, module, *args, **kwargs):
        self.module = module
        self.args = args
        self.kwargs = kwargs

    def __call__(self, *x):
        self.module.nfe += 1  # host-side counter, identical per-call semantics
        return self.module(*x, *self.args, **self.kwargs)


def integrate_spring(partial_vf, x0, dt, num_steps):
    """Fused RK4 solve: all 4*num_steps RHS evaluations inside ONE pallas_call."""
    if partial_vf.args or partial_vf.kwargs:
        # TODO(synk): bound Partial args/kwargs are not folded into the fused
        # kernel; the spring script binds none, so fail loudly rather than fake it.
        raise NotImplementedError("fused solve does not support bound Partial args")
    m = partial_vf.module
    traj = _integrate_impl(
        x0, m.w1, m.b1, m.w2, m.b2, dt=float(dt), num_steps=int(num_steps)
    )
    # TODO(synk): `nfe` is a host-side Python counter; with the solve fused into
    # one kernel it is bumped once per solve by the number of RHS evaluations
    # performed inside the kernel (4 per RK4 step), not once per Python call.
    m.nfe += 4 * int(num_steps)
    return traj


if __name__ == "__main__":
    key = jax.random.PRNGKey(0)
    k_param, k_x = jax.random.split(key)

    B, D, H = 8, 2, 32          # batch, spring state dim (pos, vel), hidden
    num_steps, dt = 16, 0.05

    odefunc = SpringODEFunc(D, H, k_param)
    partial_vf = Partial(odefunc)  # no extra bound args in this instantiation

    x = jax.random.normal(k_x, (B, D), dtype=jnp.float32)

    # 1) Single Partial.forward evaluation (exact PyTorch semantics: nfe += 1).
    out = jax.block_until_ready(partial_vf(x))
    ref = jnp.tanh(x @ odefunc.w1 + odefunc.b1) @ odefunc.w2 + odefunc.b2
    assert out.shape == (B, D)
    assert odefunc.nfe == 1
    assert jnp.allclose(out, ref, atol=1e-5, rtol=1e-5)

    # 2) Fused RK4 solve: every RHS evaluation of the integration runs inside
    #    one pallas_call with resident weights, hoisted broadcasts, a single
    #    time-chunked grid step and a dense (8,128)-aligned writeback.
    traj = jax.block_until_ready(integrate_spring(partial_vf, x, dt, num_steps))

    def ref_rhs(z):
        return jnp.tanh(z @ odefunc.w1 + odefunc.b1) @ odefunc.w2 + odefunc.b2

    ref_traj = []
    z = x
    for _ in range(num_steps):
        k1 = ref_rhs(z)
        k2 = ref_rhs(z + 0.5 * dt * k1)
        k3 = ref_rhs(z + 0.5 * dt * k2)
        k4 = ref_rhs(z + dt * k3)
        z = z + (dt / 6.0) * (k1 + 2.0 * k2 + 2.0 * k3 + k4)
        ref_traj.append(z)
    ref_traj = jnp.stack(ref_traj)

    assert traj.shape == (num_steps, B, D)
    assert odefunc.nfe == 1 + 4 * num_steps
    assert jnp.allclose(traj, ref_traj, atol=1e-3, rtol=1e-3)

    print("KERNEL_OK")
</pallas_src>

<mosaic_0001>
module attributes {stable_mosaic.version = 11 : i64} {
  func.func @_vf_kernel(%arg0: memref<2x128xf32, #tpu.memory_space<vmem>>, %arg1: memref<32x2xf32, #tpu.memory_space<vmem>>, %arg2: memref<32x1xf32, #tpu.memory_space<vmem>>, %arg3: memref<2x32xf32, #tpu.memory_space<vmem>>, %arg4: memref<2x1xf32, #tpu.memory_space<vmem>>, %arg5: memref<2x128xf32, #tpu.memory_space<vmem>>) attributes {dimension_semantics = [], scalar_prefetch = 0 : i64, scratch_operands = 0 : i64, tpu.core_type = #tpu.core_type<tc>} {
    %c0 = arith.constant 0 : index
    %c0_0 = arith.constant 0 : index
    %0 = vector.load %arg0[%c0, %c0_0] : memref<2x128xf32, #tpu.memory_space<vmem>>, vector<2x128xf32>
    %c0_1 = arith.constant 0 : index
    %c0_2 = arith.constant 0 : index
    %1 = vector.load %arg1[%c0_1, %c0_2] : memref<32x2xf32, #tpu.memory_space<vmem>>, vector<32x2xf32>
    %c0_3 = arith.constant 0 : index
    %c0_4 = arith.constant 0 : index
    %2 = vector.load %arg2[%c0_3, %c0_4] : memref<32x1xf32, #tpu.memory_space<vmem>>, vector<32x1xf32>
    %3 = vector.extract_strided_slice %1 {offsets = [0, 0], sizes = [32, 1], strides = [1, 1]} : vector<32x2xf32> to vector<32x1xf32>
    %4 = vector.extract_strided_slice %0 {offsets = [0, 0], sizes = [1, 128], strides = [1, 1]} : vector<2x128xf32> to vector<1x128xf32>
    %5 = vector.broadcast %3 : vector<32x1xf32> to vector<32x128xf32>
    %6 = vector.broadcast %4 : vector<1x128xf32> to vector<32x128xf32>
    %7 = arith.mulf %5, %6 : vector<32x128xf32>
    %8 = vector.broadcast %2 : vector<32x1xf32> to vector<32x128xf32>
    %9 = arith.addf %8, %7 : vector<32x128xf32>
    %10 = vector.extract_strided_slice %1 {offsets = [0, 1], sizes = [32, 1], strides = [1, 1]} : vector<32x2xf32> to vector<32x1xf32>
    %11 = vector.extract_strided_slice %0 {offsets = [1, 0], sizes = [1, 128], strides = [1, 1]} : vector<2x128xf32> to vector<1x128xf32>
    %12 = vector.broadcast %10 : vector<32x1xf32> to vector<32x128xf32>
    %13 = vector.broadcast %11 : vector<1x128xf32> to vector<32x128xf32>
    %14 = arith.mulf %12, %13 : vector<32x128xf32>
    %15 = arith.addf %9, %14 : vector<32x128xf32>
    %16 = math.tanh %15 : vector<32x128xf32>
    %c0_5 = arith.constant 0 : index
    %c0_6 = arith.constant 0 : index
    %17 = vector.load %arg3[%c0_5, %c0_6] : memref<2x32xf32, #tpu.memory_space<vmem>>, vector<2x32xf32>
    %cst = arith.constant dense<0.000000e+00> : vector<2x128xf32>
    %18 = tpu.matmul %17, %16, %cst {dimension_numbers = #tpu.dot_dimension_numbers<[1], [0], [0], [1], [0, 0, 1, 1], [], []>} : vector<2x32xf32>, vector<32x128xf32>, vector<2x128xf32> -> vector<2x128xf32>
    %c0_7 = arith.constant 0 : index
    %c0_8 = arith.constant 0 : index
    %19 = vector.load %arg4[%c0_7, %c0_8] : memref<2x1xf32, #tpu.memory_space<vmem>>, vector<2x1xf32>
    %20 = vector.broadcast %19 : vector<2x1xf32> to vector<2x128xf32>
    %21 = arith.addf %18, %20 : vector<2x128xf32>
    %c0_9 = arith.constant 0 : index
    %c0_10 = arith.constant 0 : index
    %22 = vector.load %arg5[%c0_9, %c0_10] : memref<2x128xf32, #tpu.memory_space<vmem>>, vector<2x128xf32>
    tpu.vector_store %arg5[%c0_9, %c0_10], %21 {strides = array<i32>} : memref<2x128xf32, #tpu.memory_space<vmem>>, vector<2x128xf32>,
    return
  }
}

</mosaic_0001>

<bundles_post_ra>
// kernel: _vf_forward.1
= control target key start
LH: loop header
LB: loop body
LE: loop exit
PB: predicated region body
PF: predicated region fallthrough
CT: control target
= control target key end

     0   :  { %v243_v0 = vmov 0   ;;  %v244_v6 = vmov 1   ;;  %v245_v10 = vmov 0.0|0.0   ;;  %vm246_vm0 = vmmov 0   ;;  %s314_s2 = inlined_call_operand.vmem [shape: f32[32,1], index: 2, kind: input, shape index: {}]   ;;  %s315_s1 = inlined_call_operand.vmem [shape: f32[32,2], index: 1, kind: input, shape index: {}]   ;;  %s316_s4 = inlined_call_operand.vmem [shape: f32[2,1], index: 4, kind: input, shape index: {}]   ;;  %s317_s0 = inlined_call_operand.vmem [shape: f32[2,128], index: 0, kind: input, shape index: {}]   ;;  %s318_s3 = inlined_call_operand.vmem [shape: f32[2,32], index: 3, kind: input, shape index: {}]   ;;  %s319_s5 = inlined_call_operand.vmem [shape: f32[2,128], index: 5, kind: output, shape index: {}]  }
   0x1   :  { %228 = vset.pattern.permute.xlu1 %v243_v0  ;;  %227 = vset.pattern.permute.xlu0 %v243_v0  ;;  %v25_v1 = vld [vmem:[%s314_s2] sm:$0xff]  ;;  %v26_v3 = vld [vmem:[%s314_s2 + $0x8] sm:$0xff]  ;;  %v24_v5 = vld [vmem:[%s315_s1 + $0x18] sm:$0xff]  ;;  %v247_v11 = vmov 0.0   ;;  %v49_v13 = vlaneseq  ;;  %vm120_vm1 = vcmask 261120  }
   0x2   :  { %v21_v2 = vld [vmem:[%s315_s1] sm:$0xff]  ;;  %59 = vperm.xlu1 %228, %v25_v1   ;;  %v22_v4 = vld [vmem:[%s315_s1 + $0x8] sm:$0xff]  ;;  %v23_v7 = vld [vmem:[%s315_s1 + $0x10] sm:$0xff]  ;;  %216 = vmatprep.subr.bf16.mxu0 %v245_v10 }
   0x3   :  { %31 = vperm.xlu0 %227, %v21_v2   ;;  %v27_v8 = vld [vmem:[%s314_s2 + $0x10] sm:$0xff]  ;;  %v28_v9 = vld [vmem:[%s314_s2 + $0x18] sm:$0xff]  ;;  %213 = vmatprep.mubr.msk.f32.mxu0 %vm246_vm0, %v247_v11  ;;  %v114_v12 = vld [vmem:[%s316_s4] sm:$0x3]  ;;  %v50_v14 = vshrl.u32 %v49_v13, 7 }
   0x4   :  { %v20_v18 = vld [vmem:[%s317_s0] sm:$0x3] }
   0x5   :  { %v51_v17 = vsub.s32 0, %v50_v14  ;;  %v99_v19 = vsub.s32 1, %v50_v14  ;;  %v113_v54 = vld [vmem:[%s318_s3] sm:$0x3] }
   0x6   :  { %64 = vperm.xlu1 %228, %v26_v3  }
   0x7   :  { %36 = vperm.xlu0 %227, %v22_v4   ;;  %v52_v22 = vrot.slane %v20_v18, %v51_v17  ;;  %v100_v23 = vrot.slane %v20_v18, %v99_v19 }
   0xa   :  { %229 = vset.pattern.permute.xlu1 %v244_v6 }
   0xb   :  { %46 = vperm.xlu0 %227, %v24_v5   ;;  %86 = vperm.xlu1 %229, %v22_v4  }
   0xf   :  { %231 = vset.pattern.permute.xlu0 %v244_v6  ;;  %230 = vset.pattern.permute.xlu1 %v243_v0 }
  0x10   :  { %82 = vperm.xlu0 %231, %v21_v2   ;;  %41 = vperm.xlu1 %230, %v23_v7  }
  0x14   :  { %90 = vperm.xlu0 %231, %v23_v7   ;;  %69 = vperm.xlu1 %230, %v27_v8  }
  0x18   :  { %234 = vset.pattern.permute.xlu0 %v243_v0  ;;  %74 = vperm.xlu1 %230, %v28_v9  }
  0x1c   :  { %232 = vset.pattern.permute.xlu1 %v244_v6 }
  0x1d   :  { %94 = vperm.xlu1 %232, %v24_v5  }
  0x21   :  { %233 = vset.pattern.permute.xlu1 %v243_v0 }
  0x22   :  { %117 = vperm.xlu1 %233, %v114_v12  }
  0x81   :  { %v60_v15 = vpop.permute.xlu1 %59 }
  0x82   :  { %v32_v16 = vpop.permute.xlu0 %31 }
  0x83   :  { %v53_v27 = vmul.f32 %v52_v22, %v32_v16 }
  0x85   :  { %v65_v20 = vpop.permute.xlu1 %64  ;;  %v77_v32 = vadd.f32 %v60_v15, %v53_v27 }
  0x86   :  { %v37_v21 = vpop.permute.xlu0 %36 }
  0x87   :  { %v54_v24 = vmul.f32 %v52_v22, %v37_v21 }
  0x89   :  { %v78_v29 = vadd.f32 %v65_v20, %v54_v24 }
  0x8a   :  { %v47_v25 = vpop.permute.xlu0 %46  ;;  %v87_v26 = vpop.permute.xlu1 %86 }
  0x8b   :  { %v102_v28 = vmul.f32 %v100_v23, %v87_v26  ;;  %v56_v42 = vmul.f32 %v52_v22, %v47_v25 }
  0x8d   :  { %v106_v30 = vadd.f32 %v102_v28, %v78_v29 }
  0x8f   :  { %v83_v31 = vpop.permute.xlu0 %82  ;;  %v42_v34 = vpop.permute.xlu1 %41  ;;  %235 = vtanh.f32 %v106_v30 }
  0x90   :  { %v101_v33 = vmul.f32 %v100_v23, %v83_v31  ;;  %v55_v38 = vmul.f32 %v52_v22, %v42_v34 }
  0x92   :  { %v105_v35 = vadd.f32 %v101_v33, %v77_v32 }
  0x93   :  { %v70_v36 = vpop.permute.xlu1 %69  ;;  %v91_v37 = vpop.permute.xlu0 %90 }
  0x94   :  { %237 = vtanh.f32 %v105_v35  ;;  %v79_v40 = vadd.f32 %v70_v36, %v55_v38  ;;  %v103_v41 = vmul.f32 %v100_v23, %v91_v37 }
  0x96   :  { %v107_v44 = vadd.f32 %v103_v41, %v79_v40 }
  0x97   :  { %v75_v39 = vpop.permute.xlu1 %74 }
  0x98   :  { %v80_v47 = vadd.f32 %v75_v39, %v56_v42  ;;  %239 = vtanh.f32 %v107_v44 }
  0x99   :  { %v236_v43 = vpop.eup %235 }
  0x9c   :  { %v95_v45 = vpop.permute.xlu1 %94 }
  0x9d   :  { %v104_v48 = vmul.f32 %v100_v23, %v95_v45 }
  0x9e   :  { %v238_v46 = vpop.eup %237 }
  0x9f   :  { %v217_v49 = vpack.c.bf16 %v236_v43, %v238_v46  ;;  %v108_v50 = vadd.f32 %v104_v48, %v80_v47 }
  0xa1   :  { %218 = vmatpush3.bf16.msra.mxu0 %v217_v49  ;;  %241 = vtanh.f32 %v108_v50  ;;  %v118_v55 = vpop.permute.xlu1 %117 }
  0xa2   :  { %219 = vmatprep.subr.bf16.mxu0 %v245_v10  ;;  %v240_v51 = vpop.eup %239 }
  0xab   :  { %v242_v52 = vpop.eup %241 }
  0xac   :  { %v220_v53 = vpack.c.bf16 %v242_v52, %v240_v51 }
  0xae   :  { %221 = vmatpush3.bf16.msra.mxu0 %v220_v53 }
  0xb1   :  { %214 = vmatmul.mubr.msk.f32.vlgmr.msra.gmra.mrb[0].mxu0 %vm120_vm1, %v113_v54 }
 0x184   :  { %v190_v56 = vpop.f32.mrb[0].mxu0 }
 0x185   :  { %v191_v57 = vadd.f32 %v190_v56, %v118_v55  ;;  %v215_v58 = vpop.f32.mrb[1].mxu0 }
 0x187   :  { %194 = vst [vmem:[%s319_s5] sm:$0x3] %v191_v57 }

</bundles_post_ra>
